<compile_context>
chip_gen: v5e
topology: v5e:2x2
jax: 0.10.0
libtpu: 0.0.40
codegen_flags: <defaults>
</compile_context>

<pallas_src>
import jax
import jax.numpy as jnp
from jax.experimental import pallas as pl
from jax.experimental.pallas import tpu as pltpu


# Bytes allowed for the double-buffered W blocks (leaves headroom for x row,
# output tile, accumulator and internal scratch under the 32 MiB limit below).
_W_DOUBLE_BUFFER_BUDGET = 24 * 1024 * 1024
# Explicit scoped-VMEM request: safe on v5e (128 MiB phys, 16 MiB default),
# v6e (128 MiB phys) and v7x (64 MiB phys per TC).
_VMEM_LIMIT_BYTES = 32 * 1024 * 1024


def _largest_tile(dim, cap):
    """Largest multiple-of-128 divisor of `dim` that is <= cap (None if none)."""
    if dim % 128 != 0 or cap < 128:
        return None
    best = None
    for t in range(128, min(dim, cap) + 1, 128):
        if dim % t == 0:
            best = t
    return best


def _row0_matvec_kernel(x_ref, w_ref, o_ref):
    """Full-K path: o[0, j-tile] = x[0, :] @ W_t[:, j-tile] (f32 accumulation).

    x_ref: [1, D_in]   (row 0 of x, resident across the grid)
    w_ref: [D_in, tn]  (pre-transposed weight slab, full reduction dim)
    o_ref: [1, tn]     (f32, lane-dense)
    """
    o_ref[...] = jnp.dot(x_ref[...], w_ref[...],
                         preferred_element_type=jnp.float32)


def _row0_matvec_ktiled_kernel(x_ref, w_ref, o_ref, acc_ref):
    """K-tiled fallback for very large D_in (f32 VMEM accumulator over K).

    x_ref: [1, D_in]  (full row, resident; sliced per K step in-kernel)
    w_ref: [tk, tn]   (pre-transposed weight tile)
    o_ref: [1, tn]    (f32)
    acc_ref: VMEM f32 [1, tn]
    """
    k = pl.program_id(1)
    tk = w_ref.shape[0]

    @pl.when(k == 0)
    def _():
        acc_ref[...] = jnp.zeros_like(acc_ref)

    start = pl.multiple_of(k * tk, 128)
    x_blk = x_ref[:, pl.ds(start, tk)]
    acc_ref[...] += jnp.dot(x_blk, w_ref[...],
                            preferred_element_type=jnp.float32)

    @pl.when(k == pl.num_programs(1) - 1)
    def _():
        o_ref[...] = acc_ref[...]


def prepare_params(w, b):
    """One-time param prep (analogous to module __init__).

    Transposes the PyTorch-layout weight [D_out, D_in] to [D_in, D_out] so the
    kernel contracts the standard (K, N) way.  Done once per parameter set,
    amortized across all forward calls.
    """
    return jnp.asarray(w).T, jnp.asarray(b)


def pass_first_forward(x, w_t, b, *, w_buffer_budget_bytes=_W_DOUBLE_BUFFER_BUDGET):
    """PassFirst(nn.Linear)(x): (x @ W.T + b)[0], computing only row 0.

    `w_t` must be the pre-transposed weight [D_in, D_out] from prepare_params.
    """
    _, D_in = x.shape
    D_in_w, D_out = w_t.shape
    assert D_in == D_in_w, "weight must be pre-transposed to [D_in, D_out]"

    # Deliberate numerics: x row is cast ONCE to the weight storage dtype
    # (bf16 weights => bf16 x on the MXU); accumulation is always f32.
    x_row = x[0:1].astype(w_t.dtype)                   # [1, D_in]
    w_bytes = jnp.dtype(w_t.dtype).itemsize

    if D_in % 128 != 0 or D_out % 128 != 0:
        # Tiny / non-lane-aligned shapes: per-call Pallas overhead and (8,128)
        # padding dominate -> let XLA fuse, with numerics matching the kernel.
        y = jnp.dot(x_row, w_t, preferred_element_type=jnp.float32)[0]
        return (y + b.astype(jnp.float32)).astype(x.dtype)

    # >= 2 blocks on the parallel D_out axis so v7x's two TensorCores each
    # stream half of W (no-op on single-TC v5e/v6e).
    tn_pref_cap = D_out // 2 if D_out >= 256 else D_out

    max_tn_fullk = w_buffer_budget_bytes // (2 * D_in * w_bytes)
    if max_tn_fullk >= 128:
        # ---- Primary path: tk = D_in, 1-D grid over D_out ------------------
        tn = _largest_tile(D_out, min(tn_pref_cap, max_tn_fullk))
        out = pl.pallas_call(
            _row0_matvec_kernel,
            out_shape=jax.ShapeDtypeStruct((1, D_out), jnp.float32),
            grid_spec=pltpu.PrefetchScalarGridSpec(
                num_scalar_prefetch=0,
                grid=(D_out // tn,),
                in_specs=[
                    pl.BlockSpec((1, D_in), lambda j: (0, 0)),    # x row, resident
                    pl.BlockSpec((D_in, tn), lambda j: (0, j)),   # W_t slab (full K)
                ],
                out_specs=pl.BlockSpec((1, tn), lambda j: (0, j)),
            ),
            compiler_params=pltpu.CompilerParams(
                dimension_semantics=("parallel",),
                vmem_limit_bytes=_VMEM_LIMIT_BYTES),
        )(x_row, w_t)
    else:
        # ---- Fallback: very large D_in -> K-tiled with f32 accumulator -----
        tn = _largest_tile(D_out, min(tn_pref_cap, 1024))
        max_tk = max(w_buffer_budget_bytes // (2 * tn * w_bytes), 128)
        tk = _largest_tile(D_in, max_tk)
        out = pl.pallas_call(
            _row0_matvec_ktiled_kernel,
            out_shape=jax.ShapeDtypeStruct((1, D_out), jnp.float32),
            grid_spec=pltpu.PrefetchScalarGridSpec(
                num_scalar_prefetch=0,
                grid=(D_out // tn, D_in // tk),
                in_specs=[
                    pl.BlockSpec((1, D_in), lambda j, k: (0, 0)),  # x row, resident
                    pl.BlockSpec((tk, tn), lambda j, k: (k, j)),   # W_t tile
                ],
                out_specs=pl.BlockSpec((1, tn), lambda j, k: (0, j)),
                scratch_shapes=[pltpu.VMEM((1, tn), jnp.float32)],
            ),
            compiler_params=pltpu.CompilerParams(
                dimension_semantics=("parallel", "arbitrary"),
                vmem_limit_bytes=_VMEM_LIMIT_BYTES),
        )(x_row, w_t)

    # Bias add + final cast in the wrapper: only D_out scalars, keeps the
    # kernel a pure W-streaming loop (no bias input stream / double buffer).
    return (out[0] + b.astype(jnp.float32)).astype(x.dtype)


# TODO(synk): the wrapped module in PassFirst is arbitrary; only the
# nn.Linear inner module is implemented here as a concrete instantiation.

if __name__ == "__main__":
    key = jax.random.PRNGKey(0)
    kx, kw, kb = jax.random.split(key, 3)

    # --- Primary (full-K, 1-D parallel grid) Pallas path, f32 ---------------
    B, D_in, D_out = 8, 256, 256
    bound = 1.0 / (D_in ** 0.5)
    x = jax.random.normal(kx, (B, D_in), dtype=jnp.float32)
    w = jax.random.uniform(kw, (D_out, D_in), minval=-bound, maxval=bound,
                           dtype=jnp.float32)           # PyTorch layout
    b = jax.random.uniform(kb, (D_out,), minval=-bound, maxval=bound,
                           dtype=jnp.float32)

    w_t, b_p = prepare_params(w, b)                     # one-time transpose
    out = pass_first_forward(x, w_t, b_p)
    jax.block_until_ready(out)
    ref = (x @ w.T + b)[0]
    assert out.shape == (D_out,)
    assert jnp.allclose(out, ref, atol=1e-4, rtol=1e-4)

    # --- bf16 weight storage (param-prep-time cast; f32 accumulation) -------
    w_t_bf16, b_bf16 = prepare_params(w.astype(jnp.bfloat16),
                                      b.astype(jnp.bfloat16))
    out_bf16 = pass_first_forward(x, w_t_bf16, b_bf16)
    jax.block_until_ready(out_bf16)
    ref_bf16 = (jnp.dot(x[0:1].astype(jnp.bfloat16), w_t_bf16,
                        preferred_element_type=jnp.float32)[0]
                + b_bf16.astype(jnp.float32)).astype(x.dtype)
    assert jnp.allclose(out_bf16, ref_bf16, atol=1e-2, rtol=1e-2)

    # --- 128-aligned but not 256/512-aligned dims (divisor-aware tiler) -----
    D_in2, D_out2 = 384, 640
    x2 = jax.random.normal(kx, (4, D_in2), dtype=jnp.float32)
    w2 = jax.random.uniform(kw, (D_out2, D_in2), minval=-0.1, maxval=0.1,
                            dtype=jnp.float32)
    b2 = jax.random.uniform(kb, (D_out2,), minval=-0.1, maxval=0.1,
                            dtype=jnp.float32)
    w2_t, b2_p = prepare_params(w2, b2)
    out2 = pass_first_forward(x2, w2_t, b2_p)
    jax.block_until_ready(out2)
    assert jnp.allclose(out2, (x2 @ w2.T + b2)[0], atol=1e-4, rtol=1e-4)

    # --- K-tiled fallback path (forced via a tiny W-buffer budget) ----------
    out_kt = pass_first_forward(x, w_t, b_p, w_buffer_budget_bytes=128 * 1024)
    jax.block_until_ready(out_kt)
    assert jnp.allclose(out_kt, ref, atol=1e-4, rtol=1e-4)

    # --- Tiny / non-128-aligned fallback (no Pallas; XLA fuses) -------------
    xt = jax.random.normal(kx, (4, 32), dtype=jnp.float32)
    wt = jax.random.uniform(kw, (32, 32), minval=-0.2, maxval=0.2,
                            dtype=jnp.float32)
    bt = jax.random.uniform(kb, (32,), minval=-0.2, maxval=0.2,
                            dtype=jnp.float32)
    wt_t, bt_p = prepare_params(wt, bt)
    out_t = pass_first_forward(xt, wt_t, bt_p)
    jax.block_until_ready(out_t)
    assert jnp.allclose(out_t, (xt @ wt.T + bt)[0], atol=1e-5, rtol=1e-5)

    print("KERNEL_OK")
</pallas_src>

<mosaic_0001>
module attributes {stable_mosaic.version = 11 : i64} {
  func.func @_row0_matvec_kernel(%arg0: i32, %arg1: memref<1x256xf32, #tpu.memory_space<vmem>>, %arg2: memref<256x128xf32, #tpu.memory_space<vmem>>, %arg3: memref<1x128xf32, #tpu.memory_space<vmem>>) attributes {dimension_semantics = [#tpu.dimension_semantics<parallel>], iteration_bounds = array<i64: 2>, scalar_prefetch = 0 : i64, scratch_operands = 0 : i64, tpu.core_type = #tpu.core_type<tc>, window_params = [{pipeline_mode = #tpu.pipeline_mode<synchronous>, transform_indices = @transform_0, window_bounds = array<i64: 1, 256>}, {transform_indices = @transform_1, window_bounds = array<i64: 256, 128>}, {transform_indices = @transform_2, window_bounds = array<i64: 1, 128>}]} {
    %c0 = arith.constant 0 : index
    %c0_0 = arith.constant 0 : index
    %0 = vector.load %arg1[%c0, %c0_0] : memref<1x256xf32, #tpu.memory_space<vmem>>, vector<1x256xf32>
    %c0_1 = arith.constant 0 : index
    %c0_2 = arith.constant 0 : index
    %1 = vector.load %arg2[%c0_1, %c0_2] : memref<256x128xf32, #tpu.memory_space<vmem>>, vector<256x128xf32>
    %cst = arith.constant dense<0.000000e+00> : vector<1x128xf32>
    %2 = tpu.matmul %0, %1, %cst {dimension_numbers = #tpu.dot_dimension_numbers<[1], [0], [0], [1], [0, 0, 1, 1], [], []>} : vector<1x256xf32>, vector<256x128xf32>, vector<1x128xf32> -> vector<1x128xf32>
    %c0_3 = arith.constant 0 : index
    %c0_4 = arith.constant 0 : index
    %3 = vector.load %arg3[%c0_3, %c0_4] : memref<1x128xf32, #tpu.memory_space<vmem>>, vector<1x128xf32>
    tpu.vector_store %arg3[%c0_3, %c0_4], %2 {strides = array<i32>} : memref<1x128xf32, #tpu.memory_space<vmem>>, vector<1x128xf32>,
    return
  }
  func.func @transform_0(%arg0: i32) -> (i32, i32) {
    %c0_i32 = arith.constant 0 : i32
    %c0_i32_0 = arith.constant 0 : i32
    %c0_i32_1 = arith.constant 0 : i32
    return %c0_i32, %c0_i32_0 : i32, i32
  }
  func.func @transform_1(%arg0: i32) -> (i32, i32) {
    %c0_i32 = arith.constant 0 : i32
    %c0_i32_0 = arith.constant 0 : i32
    return %c0_i32, %arg0 : i32, i32
  }
  func.func @transform_2(%arg0: i32) -> (i32, i32) {
    %c0_i32 = arith.constant 0 : i32
    %c0_i32_0 = arith.constant 0 : i32
    return %c0_i32, %arg0 : i32, i32
  }
}

</mosaic_0001>

<bundles_post_ra>
// kernel: tpu_custom_call.1
= control target key start
LH: loop header
LB: loop body
LE: loop exit
PB: predicated region body
PF: predicated region fallthrough
CT: control target
= control target key end

     0   :  { %7 = vsyncpa [#allocation3], 0  ;;  %s746_s0 = inlined_call_operand.hbm [shape: f32[1,256], index: 0, kind: input, shape index: {}]   ;;  %s747_s1 = inlined_call_operand.hbm [shape: f32[256,256], index: 1, kind: input, shape index: {}]   ;;  %s748_s2 = inlined_call_operand.hbm [shape: f32[1,256], index: 2, kind: output, shape index: {}]  }
   0x1   :  { %8 = vsyncpa [#allocation6], 0 }
   0x2   :  { %10 = vsyncpa [#allocation6 + $0x1], 0 }
   0x3   :  { %11 = vsyncpa [#allocation4], 0 }
   0x4   :  { %13 = vsyncpa [#allocation4 + $0x1], 0  ;;  %s569_s9 = smov 0   ;;  %s571_s10 = smov 0  }
   0x5   :  { %s573_s11 = smov 0   ;;  %s575_s12 = smov 0  }
   0x6 LB: > { %s590_s13 = sadd.s32 4294967295, %s548_s12   ;;  %s347_s14 = sadd.s32 4294967294, %s548_s12   ;;  %s548_s12 = sphi %s575_s12, %s759_s12   ;;  %s544_s11 = sphi %s573_s11, %s758_s11   ;;  %s540_s10 = sphi %s571_s10, %s757_s10   ;;  %s536_s9 = sphi %s569_s9, %s756_s9  }
   0x7   : > { %s594_s15 = sadd.s32 1, %s548_s12   ;;  %s47_s16 = sadd.s32 1, %s544_s11 }
   0x8   : > { %s44_s17 = ssub.s32 %s548_s12, %s594_s15  ;;  %p54_p0 = scmp.ne.s32.totalorder %s544_s11, %s540_s10 }
   0x9   : > { %p45_p1 = scmp.eq.s32.totalorder %s44_s17, 0  ;;  %p55_p2 = scmp.eq.s32.totalorder %s548_s12, 0 }
   0xa   : > { %p60_p3 = scmp.ne.s32.totalorder %s540_s10, %s536_s9  ;;  %p61_p4 = scmp.eq.s32.totalorder %s590_s13, 0 }
   0xb   : > { %s606_s18 = scalar_select %p45_p1, %s544_s11, %s47_s16  }
   0xc   : > { %p608_p5 = por %p55_p2, %p54_p0  ;;  %p614_p6 = por %p61_p4, %p60_p3 }
   0xd   : > { %p84_p7 = scmp.eq.s32.totalorder %s590_s13, 1  ;;  %p90_p8 = scmp.eq.s32.totalorder %s347_s14, 1 }
   0xe   : > { %p348_p9 = scmp.ge.s32.totalorder %s548_s12, 1  ;;  %p97_p10 = scmp.lt.s32.totalorder %s548_s12, 3 }
   0xf   : > { %p621_p11 = por %p84_p7, %p54_p0  ;;  %p625_p12 = por %p90_p8, %p60_p3 }
  0x10   : > { %p629_p13 = pnand %p348_p9, %p97_p10  ;;  %s109_s26 = sshll.u32 %s746_s0, 4  ;;  %s110_s26 = int_to_ptr.hbm [resolvable:$true] %s109_s26 }
  0x11   : > { %s550_s27 = smov [#allocation2]   ;;  %p379_p3 = scmp.lt.s32.totalorder %s548_s12, 2 }
  0x12   : > { %p366_p1 = pneg %p629_p13  ;;  %s111_s28 = sshll.u32 %s550_s27, 4  ;;  %s112_s28 = int_to_ptr.vmem [resolvable:$true] %s111_s28 }
  0x13   : > { %s122_s29 = sand.u32 1, %s544_s11   ;;  %p645_p7 = pnand %p379_p3, %p608_p5 }
  0x14   : > { %p367_p2 = pnand %p366_p1, %p61_p4  ;;  %s351_s3 = sshll.u32 %s122_s29, 8 }
  0x15   : > { %s352_s4 = sshll.u32 %s548_s12, 3  ;;  %s126_s14 = scalar_lea.vmem [#allocation5], %s351_s3 }
  0x16   : > { %369 = dma.hbm_to_vmem [thread:$0]  (!%p367_p2), %s110_s26, 32, %s112_s28, [#allocation3]  }
  0x17   : > { %s130_s7 = scalar_lea.hbm %s747_s1, %s352_s4  ;;  %s133_s16 = sshll.u32 %s126_s14, 4  ;;  %s134_s16 = int_to_ptr.vmem [resolvable:$true] %s133_s16 }
  0x18   : > { %s131_s8 = sshll.u32 %s130_s7, 4  ;;  %s123_s17 = scalar_lea.sflag [#allocation6], %s122_s29  ;;  %s132_s8 = int_to_ptr.hbm [resolvable:$true] %s131_s8 }
  0x19   : > { %s448_s24 = sshra.s32 %s132_s8, 4  ;;  %p452_p8 = pneg %p645_p7  ;;  %s449_s24 = int_to_ptr.hbm [resolvable:$true] %s448_s24 }
  0x1a   : > { %s450_s19 = scalar_lea.hbm %s449_s24, 256  ;;  %s455_s27 = scalar_lea.hbm %s747_s1, 512 }
  0x1b   : > { %p451_p5 = scmp.ne.s32.totalorder %s449_s24, %s450_s19  ;;  %p456_p1 = scmp.lt.s32.totalorder %s449_s24, %s747_s1 }
  0x1c   : > { %p457_p2 = scmp.lt.s32.totalorder %s455_s27, %s450_s19 }
  0x1d   : > { %p453_p9 = pnand %p452_p8, %p451_p5 }
  0x1e   : > { %p458_p3 = por %p457_p2, %p456_p1 }
  0x1f   : > { %p454_p10 = pneg %p453_p9 }
  0x21   : > { %p459_p0 = pnand %p458_p3, %p454_p10 }
  0x23   : > { %462 = shalt.err (!%p459_p0)
}
  0x24   : > { %s551_s29 = smov 256   ;;  %s552_s3 = smov 128  }
  0x25   : > { %s553_s5 = smov 8   ;;  %145 = sbr.rel (%p629_p13) target bundleno = 211 (0xd3), region = 28 }
  0x26   : > { %373 = dma.hbm_to_vmem [thread:$0]  (!%p645_p7), %s132_s8, 4096, %s134_s16, %s123_s17, %s551_s29, %s552_s3, %s553_s5  }
  0x2a   : > { %523 = dma.done.wait (%p61_p4), [#allocation3], 32  }
  0x2b   : > { %525 = vsyncadd (%p61_p4), [#allocation3], 4294967264  ;;  %s670_s6 = sand.u32 1, %s540_s10  }
  0x2c   : > { %s355_s7 = sshll.u32 %s670_s6, 8  ;;  %s153_s14 = scalar_lea.sflag [#allocation6], %s670_s6 }
  0x2d   : > { %s674_s24 = scalar_lea.vmem [#allocation5], %s355_s7 }
  0x2e   : > { %527 = dma.done.wait (%p614_p6), %s153_s14, 4096  }
  0x2f   : > { %529 = vsyncadd (%p614_p6), %s153_s14, 4294963200  ;;  %v193_v0 = vld [vmem:[%s674_s24 + $0x78] sm:$0xff]  ;;  %v192_v2 = vld [vmem:[%s674_s24 + $0x70] sm:$0xff]  ;;  %s265_s30 = scalar_lea.hbm %s748_s2, %s590_s13  ;;  %s176_s8 = scalar_lea.vmem [#allocation7], %s670_s6 }
  0x30   : > { %v209_v1 = vld [vmem:[%s674_s24 + $0xf8] sm:$0xff]  ;;  %215 = vmatpush.msra.mxu0 %v193_v0  ;;  %v208_v3 = vld [vmem:[%s674_s24 + $0xf0] sm:$0xff]  ;;  %v191_v4 = vld [vmem:[%s674_s24 + $0x68] sm:$0xff]  ;;  %s267_s16 = sshll.u32 %s176_s8, 4  ;;  %s269_s17 = sshll.u32 %s265_s30, 4  ;;  %s268_s16 = int_to_ptr.vmem [resolvable:$true] %s267_s16  ;;  %s270_s17 = int_to_ptr.hbm [resolvable:$true] %s269_s17 }
  0x31   : > { %235 = vmatpush.msra.mxu1 %v209_v1  ;;  %v207_v5 = vld [vmem:[%s674_s24 + $0xe8] sm:$0xff]  ;;  %v190_v6 = vld [vmem:[%s674_s24 + $0x60] sm:$0xff]  ;;  %v189_v8 = vld [vmem:[%s674_s24 + $0x58] sm:$0xff]  ;;  %s257_s19 = scalar_lea.sflag [#allocation4], %s670_s6  ;;  %s492_s25 = sshra.s32 %s270_s17, 4  ;;  %s493_s25 = int_to_ptr.hbm [resolvable:$true] %s492_s25 }
  0x32   : > { %216 = vmatpush.msra.mxu0 %v192_v2  ;;  %v206_v7 = vld [vmem:[%s674_s24 + $0xe0] sm:$0xff]  ;;  %v205_v9 = vld [vmem:[%s674_s24 + $0xd8] sm:$0xff]  ;;  %v188_v10 = vld [vmem:[%s674_s24 + $0x50] sm:$0xff]  ;;  %s494_s26 = scalar_lea.hbm %s493_s25, 1  ;;  %s498_s13 = scalar_lea.hbm %s748_s2, 2 }
  0x33   : > { %236 = vmatpush.msra.mxu1 %v208_v3  ;;  %v204_v11 = vld [vmem:[%s674_s24 + $0xd0] sm:$0xff]  ;;  %v187_v12 = vld [vmem:[%s674_s24 + $0x48] sm:$0xff]  ;;  %v186_v14 = vld [vmem:[%s674_s24 + $0x40] sm:$0xff]  ;;  %p495_p4 = scmp.ne.s32.totalorder %s493_s25, %s494_s26  ;;  %p499_p0 = scmp.lt.s32.totalorder %s493_s25, %s748_s2 }
  0x34   : > { %217 = vmatpush.msra.mxu0 %v191_v4  ;;  %v203_v13 = vld [vmem:[%s674_s24 + $0xc8] sm:$0xff]  ;;  %v202_v15 = vld [vmem:[%s674_s24 + $0xc0] sm:$0xff]  ;;  %v185_v16 = vld [vmem:[%s674_s24 + $0x38] sm:$0xff]  ;;  %p500_p7 = scmp.lt.s32.totalorder %s498_s13, %s494_s26 }
  0x35   : > { %237 = vmatpush.msra.mxu1 %v207_v5  ;;  %v201_v17 = vld [vmem:[%s674_s24 + $0xb8] sm:$0xff]  ;;  %v184_v18 = vld [vmem:[%s674_s24 + $0x30] sm:$0xff]  ;;  %v183_v20 = vld [vmem:[%s674_s24 + $0x28] sm:$0xff]  ;;  %p496_p6 = pnand %p495_p4, %p621_p11 }
  0x36   : > { %218 = vmatpush.msra.mxu0 %v190_v6  ;;  %v200_v19 = vld [vmem:[%s674_s24 + $0xb0] sm:$0xff]  ;;  %v199_v21 = vld [vmem:[%s674_s24 + $0xa8] sm:$0xff]  ;;  %v182_v22 = vld [vmem:[%s674_s24 + $0x20] sm:$0xff]  ;;  %p501_p5 = por %p500_p7, %p499_p0 }
  0x37   : > { %238 = vmatpush.msra.mxu1 %v206_v7  ;;  %v198_v23 = vld [vmem:[%s674_s24 + $0xa0] sm:$0xff]  ;;  %v181_v24 = vld [vmem:[%s674_s24 + $0x18] sm:$0xff]  ;;  %v180_v26 = vld [vmem:[%s674_s24 + $0x10] sm:$0xff]  ;;  %p497_p13 = pneg %p496_p6 }
  0x38   : > { %219 = vmatpush.msra.mxu0 %v189_v8  ;;  %v197_v25 = vld [vmem:[%s674_s24 + $0x98] sm:$0xff]  ;;  %v196_v27 = vld [vmem:[%s674_s24 + $0x90] sm:$0xff]  ;;  %v179_v29 = vld [vmem:[%s674_s24 + $0x8] sm:$0xff] }
  0x39   : > { %239 = vmatpush.msra.mxu1 %v205_v9  ;;  %v177_v28 = vld [vmem:[#allocation2] sm:$0x3]  ;;  %v195_v30 = vld [vmem:[%s674_s24 + $0x88] sm:$0xff]  ;;  %v178_v31 = vld [vmem:[%s674_s24] sm:$0xff]  ;;  %p502_p8 = pnand %p501_p5, %p497_p13 }
  0x3a   : > { %220 = vmatpush.msra.mxu0 %v188_v10  ;;  %v194_v32 = vld [vmem:[%s674_s24 + $0x80] sm:$0xff]  ;;  %v211_v33 = vperm.slane %v177_v28, 0  ;;  %v212_v34 = vperm.slane %v177_v28, 1 }
  0x3b   : > { %240 = vmatpush.msra.mxu1 %v204_v11 }
  0x3c   : > { %221 = vmatpush.msra.mxu0 %v187_v12 }
  0x3d   : > { %241 = vmatpush.msra.mxu1 %v203_v13 }
  0x3e   : > { %222 = vmatpush.msra.mxu0 %v186_v14 }
  0x3f   : > { %242 = vmatpush.msra.mxu1 %v202_v15 }
  0x40   : > { %223 = vmatpush.msra.mxu0 %v185_v16 }
  0x41   : > { %243 = vmatpush.msra.mxu1 %v201_v17 }
  0x42   : > { %224 = vmatpush.msra.mxu0 %v184_v18 }
  0x43   : > { %244 = vmatpush.msra.mxu1 %v200_v19 }
  0x44   : > { %225 = vmatpush.msra.mxu0 %v183_v20 }
  0x45   : > { %245 = vmatpush.msra.mxu1 %v199_v21 }
  0x46   : > { %226 = vmatpush.msra.mxu0 %v182_v22 }
  0x47   : > { %246 = vmatpush.msra.mxu1 %v198_v23 }
  0x48   : > { %227 = vmatpush.msra.mxu0 %v181_v24 }
  0x49   : > { %247 = vmatpush.msra.mxu1 %v197_v25 }
  0x4a   : > { %228 = vmatpush.msra.mxu0 %v180_v26 }
  0x4b   : > { %248 = vmatpush.msra.mxu1 %v196_v27 }
  0x4c   : > { %229 = vmatpush.msra.mxu0 %v179_v29 }
  0x4d   : > { %249 = vmatpush.msra.mxu1 %v195_v30 }
  0x4e   : > { %230 = vmatpush.msra.mxu0 %v178_v31 }
  0x4f   : > { %250 = vmatpush.msra.mxu1 %v194_v32  ;;  %231 = vmatmul.f32.vlgmr.msra.gmra.mxu0 %v211_v33 }
  0x50   : > { %251 = vmatmul.f32.vlgmr.msra.gmra.mxu1 %v212_v34 }
  0xcc   : > { %v232_v35 = vpop.f32.mrf.mxu0 }
  0xcd   : > { %v252_v36 = vpop.f32.mrf.mxu1 }
  0xce   : > { %v253_v37 = vadd.f32 %v252_v36, %v232_v35 }
  0xd0   : > { %255 = vst [vmem:[%s176_s8] sm:$0x1] %v253_v37 }
  0xd1   : > { %505 = shalt.err (!%p502_p8)
}
  0xd2   : > { %364 = dma.vmem_to_hbm [thread:$0]  (%p621_p11), %s268_s16, 16, %s270_s17, %s257_s19  }
  0xd3 PF: > { %s281_s3 = sand.u32 1, %s536_s9   ;;  %p755_p9 = scmp.ge.s32.totalorder %s548_s12, 2 }
  0xd4   : > { %s282_s5 = scalar_lea.sflag [#allocation4], %s281_s3 }
  0xd5   : > { %p375_p10 = pnand %p755_p9, %p625_p12 }
  0xd7   : > { %p376_p1 = pneg %p375_p10 }
  0xd9   : > { %531 = dma.done.wait (%p376_p1), %s282_s5, 16  }
  0xda   : > { %533 = vsyncadd (%p376_p1), %s282_s5, 4294967280  ;;  %p16_p2 = scmp.ge.s32.totalorder %s594_s15, 4   ;;  %s756_s9 = smov %s540_s10 }
  0xdb   : > { %s757_s10 = smov %s544_s11  ;;  %s758_s11 = smov %s606_s18 }
  0xdc   : > { %s759_s12 = smov %s594_s15  ;;  %18 = sbr.rel (!%p16_p2) target bundleno = 6 (0x6), region = 78 }
  0xe1   :  { %287 = vsyncpa [#allocation3], 1 }
  0xe2   :  { %289 = vsyncpa [#allocation3 + $0x1], 1 }
  0xe3   :  { %290 = vsyncpa [#allocation6], 1 }
  0xe4   :  { %292 = vsyncpa [#allocation6 + $0x1], 1 }
  0xe5   :  { %293 = vsyncpa [#allocation4], 1 }
  0xe6   :  { %295 = vsyncpa [#allocation4 + $0x1], 1 }

</bundles_post_ra>
